<compile_context>
chip_gen: v6e
topology: v6e:2x2x1
jax: 0.10.0
libtpu: 0.0.40
codegen_flags: <defaults>
</compile_context>

<pallas_src>
import math

import jax
import jax.numpy as jnp
from jax.experimental import pallas as pl
from jax.experimental.pallas import tpu as pltpu

LANE = 128
SUB = 8


def _round_up(a, m):
    return (a + m - 1) // m * m


def _cdiv(a, b):
    return -(-a // b)


# ---------------------------------------------------------------------------
# Kernels
# ---------------------------------------------------------------------------

def _make_fused_kernel(batch, cnt, residual, use_bn, project_first):
    """grid=(node_tiles,): each step holds all `batch` graphs for one node tile,
    computes h = relu(l2norm(aggregate/project + b)) (+x) and applies BatchNorm
    with per-node statistics entirely in-kernel."""

    def kernel(*refs):
        i = 0
        adj_ref = refs[i]; i += 1            # (B, tn, N_p)   mxu dtype
        feat_ref = refs[i]; i += 1           # (B, N_p, D_p)  mxu dtype (x or x@W^T)
        wt_ref = None
        if not project_first:
            wt_ref = refs[i]; i += 1         # (Fin_p, Fout_p) mxu dtype
        b_ref = refs[i]; i += 1              # (1, Fout_p) f32
        xres_ref = None
        if residual:
            xres_ref = refs[i]; i += 1       # (B, tn, Fin_p) f32
        o_ref = refs[i]                      # (B, tn, Fout_p) f32

        bias = b_ref[...]
        wt = wt_ref[...] if wt_ref is not None else None

        hs = []
        s_tot = None
        q_tot = None
        for bi in range(batch):              # static unroll; batch is small here
            # aggregation: bf16 x bf16 -> f32 accumulation (fast MXU path)
            h = jnp.dot(adj_ref[bi], feat_ref[bi],
                        preferred_element_type=jnp.float32)
            if wt is not None:               # projection (skipped if pre-projected)
                h = jnp.dot(h.astype(wt.dtype), wt,
                            preferred_element_type=jnp.float32)
            h = h + bias
            # F.normalize(p=2): h / max(||h||, 1e-12) == h * rsqrt(max(||h||^2, 1e-24))
            ssq = jnp.sum(h * h, axis=-1, keepdims=True)
            h = h * jax.lax.rsqrt(jnp.maximum(ssq, 1e-24))
            h = jnp.maximum(h, 0.0)          # relu
            if xres_ref is not None:
                h = h + xres_ref[bi]
            if use_bn:
                # padded feature columns are exactly zero -> sums over real features
                s = jnp.sum(h, axis=-1, keepdims=True)
                q = jnp.sum(h * h, axis=-1, keepdims=True)
                s_tot = s if s_tot is None else s_tot + s
                q_tot = q if q_tot is None else q_tot + q
                hs.append(h)
            else:
                o_ref[bi] = h
        if use_bn:
            mu = s_tot * (1.0 / cnt)                          # (tn, 1)
            var = q_tot * (1.0 / cnt) - mu * mu               # biased variance
            inv = jax.lax.rsqrt(var + 1e-5)
            for bi in range(batch):
                o_ref[bi] = (hs[bi] - mu) * inv

    return kernel


def _make_split_kernel(residual, use_bn, project_first):
    """grid=(B, node_tiles): emits h plus per-node partial BN sums (if use_bn)."""

    def kernel(*refs):
        i = 0
        adj_ref = refs[i]; i += 1            # (1, tn, N_p)
        feat_ref = refs[i]; i += 1           # (1, N_p, D_p)
        wt_ref = None
        if not project_first:
            wt_ref = refs[i]; i += 1
        b_ref = refs[i]; i += 1
        xres_ref = None
        if residual:
            xres_ref = refs[i]; i += 1
        h_ref = refs[i]; i += 1              # (1, tn, Fout_p)
        s_ref = q_ref = None
        if use_bn:
            s_ref = refs[i]; i += 1          # (1, tn, 1)
            q_ref = refs[i]; i += 1

        h = jnp.dot(adj_ref[0], feat_ref[0], preferred_element_type=jnp.float32)
        if wt_ref is not None:
            wt = wt_ref[...]
            h = jnp.dot(h.astype(wt.dtype), wt, preferred_element_type=jnp.float32)
        h = h + b_ref[...]
        ssq = jnp.sum(h * h, axis=-1, keepdims=True)
        h = h * jax.lax.rsqrt(jnp.maximum(ssq, 1e-24))
        h = jnp.maximum(h, 0.0)
        if xres_ref is not None:
            h = h + xres_ref[0]
        h_ref[0] = h
        if use_bn:
            s_ref[0] = jnp.sum(h, axis=-1, keepdims=True)
            q_ref[0] = jnp.sum(h * h, axis=-1, keepdims=True)

    return kernel


def _bn_apply_kernel(h_ref, mu_ref, inv_ref, o_ref):
    """(h - mean[node]) * invstd[node] on the original (B, N, Fout) layout."""
    o_ref[0] = (h_ref[0] - mu_ref[...]) * inv_ref[...]


# ---------------------------------------------------------------------------
# Wrapper
# ---------------------------------------------------------------------------

def _vmem_budget():
    try:
        info = pltpu.get_tpu_info()
        phys = int(getattr(info, "vmem_capacity_bytes", 0) or 0)
    except Exception:
        phys = 0
    if phys <= 0:
        phys = 64 << 20           # conservative default (v7x per-core VMEM)
    return max(phys * 3 // 4, 32 << 20)   # ~96 MiB on v5e/v6e, ~48 MiB on v7x


def dense_graphsage_forward(x, adj, W, b, residual=False, use_bn=True,
                            mean=False, add_self=False, node_tile=256,
                            assume_binary_adj=True, force_split=False):
    x = jnp.asarray(x, jnp.float32)
    adj = jnp.asarray(adj, jnp.float32)
    W = jnp.asarray(W, jnp.float32)
    b = jnp.asarray(b, jnp.float32)

    B, N, Fin = x.shape
    Fout = W.shape[0]
    if Fin != Fout:
        residual = False          # mirrors the module __init__

    # adjacency preprocessing (module defaults: both off)
    if add_self:
        adj = adj + jnp.eye(N, dtype=adj.dtype)[None]
    if mean:
        # TODO(synk): keep adj binary/bf16 and fold the row normalisation into a
        # post-aggregation scale diag(1/deg) @ (adj @ x) to stay on the bf16 MXU path.
        adj = adj / jnp.sum(adj, axis=-1, keepdims=True)

    # MXU operand dtype: bf16 is exact for 0/1 adjacency (and small ints);
    # fall back to f32 (slower multi-pass MXU) for weighted / mean-normalised adj.
    mxu_dtype = jnp.bfloat16 if (assume_binary_adj and not mean) else jnp.float32
    esz = 2 if mxu_dtype == jnp.bfloat16 else 4

    Fin_p = _round_up(Fin, LANE)
    Fout_p = _round_up(Fout, LANE)
    # reassociate (adj @ x) @ W^T -> adj @ (x @ W^T) when the projected width is
    # smaller: aggregation FLOPs and resident VMEM scale with min(Fin_p, Fout_p).
    project_first = Fout_p < Fin_p
    D_p = Fout_p if project_first else Fin_p
    cnt = float(B * Fout)         # real BN element count (padded features are zero)

    # ---- VMEM-aware node tiling & path selection ----------------------------
    budget = _vmem_budget()

    def _est_fused(tn_, np_):     # per-step bytes, double-buffered blocks + live temps
        return (2 * (B * tn_ * np_ * esz + B * np_ * D_p * esz
                     + (0 if project_first else Fin_p * Fout_p * esz)
                     + Fout_p * 4
                     + (B * tn_ * Fin_p * 4 if residual else 0)
                     + B * tn_ * Fout_p * 4)
                + B * tn_ * Fout_p * 4 + tn_ * D_p * 4 + (2 << 20))

    def _est_split(tn_, np_):
        return (2 * (tn_ * np_ * esz + np_ * D_p * esz
                     + (0 if project_first else Fin_p * Fout_p * esz)
                     + Fout_p * 4
                     + (tn_ * Fin_p * 4 if residual else 0)
                     + tn_ * Fout_p * 4 + 2 * tn_ * 4)
                + tn_ * D_p * 4 + tn_ * Fout_p * 4 + (2 << 20))

    def _tiles(nt_):
        tn_ = _round_up(max(1, _cdiv(N, nt_)), SUB)
        return tn_, nt_ * tn_

    n_tiles = max(1, _cdiv(N, int(node_tile)))
    tn, N_p = _tiles(n_tiles)

    use_fused = (use_bn and not force_split and B <= 8
                 and _est_fused(tn, N_p) <= budget)
    if not use_fused:
        # TODO(synk): K-tile the aggregation so the resident (N_p, D_p) block stops
        # scaling with N; for now only the node tile is shrunk.
        while _est_split(tn, N_p) > budget and tn > SUB:
            n_tiles *= 2
            tn, N_p = _tiles(n_tiles)
    n_tiles = N_p // tn

    # ---- pad to TPU-friendly shapes (feature lanes -> multiples of 128) -----
    x_p = jnp.pad(x, ((0, 0), (0, N_p - N), (0, Fin_p - Fin)))
    adj_p = jnp.pad(adj, ((0, 0), (0, N_p - N), (0, N_p - N))).astype(mxu_dtype)
    wt = jnp.transpose(W)                                     # (Fin, Fout)
    b_p = jnp.pad(b, (0, Fout_p - Fout)).reshape(1, Fout_p)

    if project_first:
        xw = jnp.einsum('bnf,fo->bno', x, wt,
                        precision=jax.lax.Precision.HIGHEST)  # small matmul in XLA
        feat_p = jnp.pad(xw, ((0, 0), (0, N_p - N),
                              (0, Fout_p - Fout))).astype(mxu_dtype)
        wt_p = None
    else:
        feat_p = x_p.astype(mxu_dtype)
        wt_p = jnp.pad(wt, ((0, Fin_p - Fin), (0, Fout_p - Fout))).astype(mxu_dtype)

    cost = pl.CostEstimate(
        flops=int(2 * B * N_p * N_p * D_p
                  + (0 if project_first else 2 * B * N_p * Fin_p * Fout_p)),
        transcendentals=int(B * N_p + N_p),
        bytes_accessed=int(B * N_p * N_p * esz + B * N_p * D_p * esz
                           + (0 if project_first else Fin_p * Fout_p * esz)
                           + B * N_p * Fout_p * 4),
    )

    # ---- path A: BN fused into the node-tiled kernel (single pass) ----------
    if use_fused:
        operands = [adj_p, feat_p]
        in_specs = [
            pl.BlockSpec((B, tn, N_p), lambda ni: (0, ni, 0)),
            pl.BlockSpec((B, N_p, D_p), lambda ni: (0, 0, 0)),   # grid-invariant
        ]
        if not project_first:
            operands.append(wt_p)
            in_specs.append(pl.BlockSpec((Fin_p, Fout_p), lambda ni: (0, 0)))
        operands.append(b_p)
        in_specs.append(pl.BlockSpec((1, Fout_p), lambda ni: (0, 0)))
        if residual:
            operands.append(x_p)
            in_specs.append(pl.BlockSpec((B, tn, Fin_p), lambda ni: (0, ni, 0)))

        out_p = pl.pallas_call(
            _make_fused_kernel(B, cnt, residual, use_bn, project_first),
            out_shape=jax.ShapeDtypeStruct((B, N_p, Fout_p), jnp.float32),
            grid_spec=pltpu.PrefetchScalarGridSpec(
                num_scalar_prefetch=0,
                grid=(n_tiles,),
                in_specs=in_specs,
                out_specs=pl.BlockSpec((B, tn, Fout_p), lambda ni: (0, ni, 0)),
            ),
            compiler_params=pltpu.CompilerParams(
                dimension_semantics=("parallel",),
                vmem_limit_bytes=int(budget)),
            cost_estimate=cost,
        )(*operands)
        return out_p[:, :N, :Fout]

    # ---- path B: split (large B or no BN) ------------------------------------
    operands = [adj_p, feat_p]
    in_specs = [
        pl.BlockSpec((1, tn, N_p), lambda bi, ni: (bi, ni, 0)),
        pl.BlockSpec((1, N_p, D_p), lambda bi, ni: (bi, 0, 0)),
    ]
    if not project_first:
        operands.append(wt_p)
        in_specs.append(pl.BlockSpec((Fin_p, Fout_p), lambda bi, ni: (0, 0)))
    operands.append(b_p)
    in_specs.append(pl.BlockSpec((1, Fout_p), lambda bi, ni: (0, 0)))
    if residual:
        operands.append(x_p)
        in_specs.append(pl.BlockSpec((1, tn, Fin_p), lambda bi, ni: (bi, ni, 0)))

    out_shapes = [jax.ShapeDtypeStruct((B, N_p, Fout_p), jnp.float32)]
    out_specs = [pl.BlockSpec((1, tn, Fout_p), lambda bi, ni: (bi, ni, 0))]
    if use_bn:
        out_shapes += [jax.ShapeDtypeStruct((B, N_p, 1), jnp.float32)] * 2
        out_specs += [pl.BlockSpec((1, tn, 1), lambda bi, ni: (bi, ni, 0)),
                      pl.BlockSpec((1, tn, 1), lambda bi, ni: (bi, ni, 0))]

    results = pl.pallas_call(
        _make_split_kernel(residual, use_bn, project_first),
        out_shape=tuple(out_shapes),
        grid_spec=pltpu.PrefetchScalarGridSpec(
            num_scalar_prefetch=0,
            grid=(B, n_tiles),
            in_specs=in_specs,
            out_specs=tuple(out_specs),
        ),
        compiler_params=pltpu.CompilerParams(
            dimension_semantics=("parallel", "parallel"),
            vmem_limit_bytes=int(budget)),
        cost_estimate=cost,
    )(*operands)

    if not use_bn:
        return results[0][:, :N, :Fout]

    h_p, s_p, q_p = results
    # tiny (N_p, 1) stats glue in XLA -- negligible traffic, no transposes
    mu = jnp.sum(s_p, axis=0) / cnt                       # (N_p, 1)
    var = jnp.sum(q_p, axis=0) / cnt - mu * mu            # biased variance (PyTorch)
    inv = jax.lax.rsqrt(var + 1e-5)

    out_p = pl.pallas_call(
        _bn_apply_kernel,
        out_shape=jax.ShapeDtypeStruct((B, N_p, Fout_p), jnp.float32),
        grid_spec=pltpu.PrefetchScalarGridSpec(
            num_scalar_prefetch=0,
            grid=(B, n_tiles),
            in_specs=[
                pl.BlockSpec((1, tn, Fout_p), lambda bi, ni: (bi, ni, 0)),
                pl.BlockSpec((tn, 1), lambda bi, ni: (ni, 0)),
                pl.BlockSpec((tn, 1), lambda bi, ni: (ni, 0)),
            ],
            out_specs=pl.BlockSpec((1, tn, Fout_p), lambda bi, ni: (bi, ni, 0)),
        ),
        compiler_params=pltpu.CompilerParams(
            dimension_semantics=("parallel", "parallel"),
            vmem_limit_bytes=int(budget)),
        input_output_aliases={0: 0},    # h is dead after BN -> reuse its buffer
    )(h_p, mu, inv)
    return out_p[:, :N, :Fout]


# ---------------------------------------------------------------------------
# Pure-JAX reference (mirrors the PyTorch forward) and init
# ---------------------------------------------------------------------------

def _reference_forward(x, adj, W, b, residual=False, use_bn=True,
                       mean=False, add_self=False):
    if x.shape[-1] != W.shape[0]:
        residual = False
    if add_self:
        adj = adj + jnp.eye(adj.shape[1], dtype=adj.dtype)[None]
    if mean:
        adj = adj / jnp.sum(adj, axis=-1, keepdims=True)
    h_n = jnp.einsum('bij,bjf->bif', adj, x, precision=jax.lax.Precision.HIGHEST)
    h = jnp.einsum('bnf,of->bno', h_n, W, precision=jax.lax.Precision.HIGHEST) + b
    nrm = jnp.sqrt(jnp.sum(h * h, axis=-1, keepdims=True))
    h = h / jnp.maximum(nrm, 1e-12)
    h = jnp.maximum(h, 0.0)
    if residual:
        h = x + h
    if use_bn:
        mu = jnp.mean(h, axis=(0, 2), keepdims=True)
        var = jnp.mean((h - mu) ** 2, axis=(0, 2), keepdims=True)
        h = (h - mu) / jnp.sqrt(var + 1e-5)
    return h


def init_params(key, infeat, outfeat):
    """nn.Linear(infeat, outfeat) with xavier_uniform_(gain=relu) weight init."""
    k_w, k_b = jax.random.split(key)
    gain = math.sqrt(2.0)  # calculate_gain('relu')
    bound_w = gain * math.sqrt(6.0 / (infeat + outfeat))
    W = jax.random.uniform(k_w, (outfeat, infeat), jnp.float32,
                           minval=-bound_w, maxval=bound_w)
    bound_b = 1.0 / math.sqrt(infeat)  # default nn.Linear bias init
    b = jax.random.uniform(k_b, (outfeat,), jnp.float32,
                           minval=-bound_b, maxval=bound_b)
    return W, b


if __name__ == "__main__":
    jitted = jax.jit(dense_graphsage_forward,
                     static_argnames=("residual", "use_bn", "mean", "add_self",
                                      "node_tile", "assume_binary_adj",
                                      "force_split"))

    def run_case(name, key, B, N, Fin, Fout, **kw):
        k_x, k_adj, k_p = jax.random.split(key, 3)
        x = jax.random.normal(k_x, (B, N, Fin), jnp.float32)
        adj = (jax.random.uniform(k_adj, (B, N, N)) > 0.5).astype(jnp.float32)
        W, b = init_params(k_p, Fin, Fout)
        out = jax.block_until_ready(jitted(x, adj, W, b, **kw))
        ref = _reference_forward(x, adj, W, b,
                                 residual=kw.get("residual", False),
                                 use_bn=kw.get("use_bn", True))
        assert out.shape == (B, N, Fout) and out.dtype == jnp.float32, name
        # bf16 MXU operands vs the f32 reference (+ BatchNorm's 1/std amplification)
        # account for ~1e-2; structural bugs would be O(1).
        assert bool(jnp.allclose(out, ref, atol=2e-2, rtol=2e-2)), name

    key = jax.random.PRNGKey(0)
    k1, k2, k3, k4, k5 = jax.random.split(key, 5)
    run_case("fused_bn",      k1, B=2, N=8,  Fin=16,  Fout=32)
    run_case("split_bn",      k2, B=2, N=8,  Fin=16,  Fout=32, force_split=True)
    run_case("project_first", k3, B=2, N=16, Fin=256, Fout=64)
    run_case("residual",      k4, B=2, N=8,  Fin=32,  Fout=32, residual=True)
    run_case("no_bn",         k5, B=2, N=8,  Fin=16,  Fout=32, use_bn=False)
    print("KERNEL_OK")
</pallas_src>

<mosaic_0001>
module attributes {stable_mosaic.version = 11 : i64} {
  func.func @kernel(%arg0: i32, %arg1: memref<2x8x8xbf16, #tpu.memory_space<vmem>>, %arg2: memref<2x8x128xbf16, #tpu.memory_space<vmem>>, %arg3: memref<128x128xbf16, #tpu.memory_space<vmem>>, %arg4: memref<1x128xf32, #tpu.memory_space<vmem>>, %arg5: memref<2x8x128xf32, #tpu.memory_space<vmem>>) attributes {dimension_semantics = [#tpu.dimension_semantics<parallel>], iteration_bounds = array<i64: 1>, scalar_prefetch = 0 : i64, scratch_operands = 0 : i64, tpu.core_type = #tpu.core_type<tc>, window_params = [{transform_indices = @transform_0, window_bounds = array<i64: 2, 8, 8>}, {pipeline_mode = #tpu.pipeline_mode<synchronous>, transform_indices = @transform_1, window_bounds = array<i64: 2, 8, 128>}, {pipeline_mode = #tpu.pipeline_mode<synchronous>, transform_indices = @transform_2, window_bounds = array<i64: 128, 128>}, {pipeline_mode = #tpu.pipeline_mode<synchronous>, transform_indices = @transform_3, window_bounds = array<i64: 1, 128>}, {transform_indices = @transform_4, window_bounds = array<i64: 2, 8, 128>}]} {
    %c0 = arith.constant 0 : index
    %c0_0 = arith.constant 0 : index
    %0 = vector.load %arg4[%c0, %c0_0] : memref<1x128xf32, #tpu.memory_space<vmem>>, vector<1x128xf32>
    %c0_1 = arith.constant 0 : index
    %c0_2 = arith.constant 0 : index
    %1 = vector.load %arg3[%c0_1, %c0_2] : memref<128x128xbf16, #tpu.memory_space<vmem>>, vector<128x128xbf16>
    %c0_3 = arith.constant 0 : index
    %c0_4 = arith.constant 0 : index
    %c0_5 = arith.constant 0 : index
    %2 = vector.load %arg1[%c0_3, %c0_4, %c0_5] : memref<2x8x8xbf16, #tpu.memory_space<vmem>>, vector<1x8x8xbf16>
    %3 = vector.shape_cast %2 : vector<1x8x8xbf16> to vector<8x8xbf16>
    %c0_6 = arith.constant 0 : index
    %c0_7 = arith.constant 0 : index
    %c0_8 = arith.constant 0 : index
    %4 = vector.load %arg2[%c0_6, %c0_7, %c0_8] : memref<2x8x128xbf16, #tpu.memory_space<vmem>>, vector<1x8x128xbf16>
    %5 = vector.shape_cast %4 : vector<1x8x128xbf16> to vector<8x128xbf16>
    %cst = arith.constant dense<0.000000e+00> : vector<8x128xf32>
    %6 = tpu.matmul %3, %5, %cst {dimension_numbers = #tpu.dot_dimension_numbers<[1], [0], [0], [1], [0, 0, 1, 1], [], []>} : vector<8x8xbf16>, vector<8x128xbf16>, vector<8x128xf32> -> vector<8x128xf32>
    %7 = arith.truncf %6 : vector<8x128xf32> to vector<8x128xbf16>
    %cst_9 = arith.constant dense<0.000000e+00> : vector<8x128xf32>
    %8 = tpu.matmul %7, %1, %cst_9 {dimension_numbers = #tpu.dot_dimension_numbers<[1], [0], [0], [1], [0, 0, 1, 1], [], []>} : vector<8x128xbf16>, vector<128x128xbf16>, vector<8x128xf32> -> vector<8x128xf32>
    %9 = vector.broadcast %0 : vector<1x128xf32> to vector<8x128xf32>
    %10 = arith.addf %8, %9 : vector<8x128xf32>
    %11 = arith.mulf %10, %10 : vector<8x128xf32>
    %cst_10 = arith.constant dense<0.000000e+00> : vector<8xf32>
    %12 = vector.multi_reduction <add>, %11, %cst_10 [1] : vector<8x128xf32> to vector<8xf32>
    %13 = vector.shape_cast %12 : vector<8xf32> to vector<8x1xf32>
    %cst_11 = arith.constant 1.000000e-24 : f32
    %14 = vector.broadcast %cst_11 : f32 to vector<8x1xf32>
    %15 = arith.maximumf %13, %14 : vector<8x1xf32>
    %16 = math.rsqrt %15 : vector<8x1xf32>
    %17 = vector.broadcast %16 : vector<8x1xf32> to vector<8x128xf32>
    %18 = arith.mulf %10, %17 : vector<8x128xf32>
    %cst_12 = arith.constant 0.000000e+00 : f32
    %19 = vector.broadcast %cst_12 : f32 to vector<8x128xf32>
    %20 = arith.maximumf %18, %19 : vector<8x128xf32>
    %cst_13 = arith.constant dense<0.000000e+00> : vector<8xf32>
    %21 = vector.multi_reduction <add>, %20, %cst_13 [1] : vector<8x128xf32> to vector<8xf32>
    %22 = vector.shape_cast %21 : vector<8xf32> to vector<8x1xf32>
    %23 = arith.mulf %20, %20 : vector<8x128xf32>
    %cst_14 = arith.constant dense<0.000000e+00> : vector<8xf32>
    %24 = vector.multi_reduction <add>, %23, %cst_14 [1] : vector<8x128xf32> to vector<8xf32>
    %25 = vector.shape_cast %24 : vector<8xf32> to vector<8x1xf32>
    %c1 = arith.constant 1 : index
    %c0_15 = arith.constant 0 : index
    %c0_16 = arith.constant 0 : index
    %26 = vector.load %arg1[%c1, %c0_15, %c0_16] : memref<2x8x8xbf16, #tpu.memory_space<vmem>>, vector<1x8x8xbf16>
    %27 = vector.shape_cast %26 : vector<1x8x8xbf16> to vector<8x8xbf16>
    %c1_17 = arith.constant 1 : index
    %c0_18 = arith.constant 0 : index
    %c0_19 = arith.constant 0 : index
    %28 = vector.load %arg2[%c1_17, %c0_18, %c0_19] : memref<2x8x128xbf16, #tpu.memory_space<vmem>>, vector<1x8x128xbf16>
    %29 = vector.shape_cast %28 : vector<1x8x128xbf16> to vector<8x128xbf16>
    %cst_20 = arith.constant dense<0.000000e+00> : vector<8x128xf32>
    %30 = tpu.matmul %27, %29, %cst_20 {dimension_numbers = #tpu.dot_dimension_numbers<[1], [0], [0], [1], [0, 0, 1, 1], [], []>} : vector<8x8xbf16>, vector<8x128xbf16>, vector<8x128xf32> -> vector<8x128xf32>
    %31 = arith.truncf %30 : vector<8x128xf32> to vector<8x128xbf16>
    %cst_21 = arith.constant dense<0.000000e+00> : vector<8x128xf32>
    %32 = tpu.matmul %31, %1, %cst_21 {dimension_numbers = #tpu.dot_dimension_numbers<[1], [0], [0], [1], [0, 0, 1, 1], [], []>} : vector<8x128xbf16>, vector<128x128xbf16>, vector<8x128xf32> -> vector<8x128xf32>
    %33 = vector.broadcast %0 : vector<1x128xf32> to vector<8x128xf32>
    %34 = arith.addf %32, %33 : vector<8x128xf32>
    %35 = arith.mulf %34, %34 : vector<8x128xf32>
    %cst_22 = arith.constant dense<0.000000e+00> : vector<8xf32>
    %36 = vector.multi_reduction <add>, %35, %cst_22 [1] : vector<8x128xf32> to vector<8xf32>
    %37 = vector.shape_cast %36 : vector<8xf32> to vector<8x1xf32>
    %cst_23 = arith.constant 1.000000e-24 : f32
    %38 = vector.broadcast %cst_23 : f32 to vector<8x1xf32>
    %39 = arith.maximumf %37, %38 : vector<8x1xf32>
    %40 = math.rsqrt %39 : vector<8x1xf32>
    %41 = vector.broadcast %40 : vector<8x1xf32> to vector<8x128xf32>
    %42 = arith.mulf %34, %41 : vector<8x128xf32>
    %cst_24 = arith.constant 0.000000e+00 : f32
    %43 = vector.broadcast %cst_24 : f32 to vector<8x128xf32>
    %44 = arith.maximumf %42, %43 : vector<8x128xf32>
    %cst_25 = arith.constant dense<0.000000e+00> : vector<8xf32>
    %45 = vector.multi_reduction <add>, %44, %cst_25 [1] : vector<8x128xf32> to vector<8xf32>
    %46 = vector.shape_cast %45 : vector<8xf32> to vector<8x1xf32>
    %47 = arith.mulf %44, %44 : vector<8x128xf32>
    %cst_26 = arith.constant dense<0.000000e+00> : vector<8xf32>
    %48 = vector.multi_reduction <add>, %47, %cst_26 [1] : vector<8x128xf32> to vector<8xf32>
    %49 = vector.shape_cast %48 : vector<8xf32> to vector<8x1xf32>
    %50 = arith.addf %22, %46 : vector<8x1xf32>
    %51 = arith.addf %25, %49 : vector<8x1xf32>
    %cst_27 = arith.constant 1.562500e-02 : f32
    %52 = vector.broadcast %cst_27 : f32 to vector<8x1xf32>
    %53 = arith.mulf %50, %52 : vector<8x1xf32>
    %cst_28 = arith.constant 1.562500e-02 : f32
    %54 = vector.broadcast %cst_28 : f32 to vector<8x1xf32>
    %55 = arith.mulf %51, %54 : vector<8x1xf32>
    %56 = arith.mulf %53, %53 : vector<8x1xf32>
    %57 = arith.subf %55, %56 : vector<8x1xf32>
    %cst_29 = arith.constant 9.99999974E-6 : f32
    %58 = vector.broadcast %cst_29 : f32 to vector<8x1xf32>
    %59 = arith.addf %57, %58 : vector<8x1xf32>
    %60 = math.rsqrt %59 : vector<8x1xf32>
    %61 = vector.broadcast %53 : vector<8x1xf32> to vector<8x128xf32>
    %62 = arith.subf %20, %61 : vector<8x128xf32>
    %63 = vector.broadcast %60 : vector<8x1xf32> to vector<8x128xf32>
    %64 = arith.mulf %62, %63 : vector<8x128xf32>
    %c0_30 = arith.constant 0 : index
    %c0_31 = arith.constant 0 : index
    %c0_32 = arith.constant 0 : index
    %65 = vector.load %arg5[%c0_30, %c0_31, %c0_32] : memref<2x8x128xf32, #tpu.memory_space<vmem>>, vector<1x8x128xf32>
    %66 = vector.shape_cast %65 : vector<1x8x128xf32> to vector<8x128xf32>
    %67 = vector.shape_cast %64 : vector<8x128xf32> to vector<1x8x128xf32>
    tpu.vector_store %arg5[%c0_30, %c0_31, %c0_32], %67 {strides = array<i32>} : memref<2x8x128xf32, #tpu.memory_space<vmem>>, vector<1x8x128xf32>,
    %68 = vector.broadcast %53 : vector<8x1xf32> to vector<8x128xf32>
    %69 = arith.subf %44, %68 : vector<8x128xf32>
    %70 = vector.broadcast %60 : vector<8x1xf32> to vector<8x128xf32>
    %71 = arith.mulf %69, %70 : vector<8x128xf32>
    %c1_33 = arith.constant 1 : index
    %c0_34 = arith.constant 0 : index
    %c0_35 = arith.constant 0 : index
    %72 = vector.load %arg5[%c1_33, %c0_34, %c0_35] : memref<2x8x128xf32, #tpu.memory_space<vmem>>, vector<1x8x128xf32>
    %73 = vector.shape_cast %72 : vector<1x8x128xf32> to vector<8x128xf32>
    %74 = vector.shape_cast %71 : vector<8x128xf32> to vector<1x8x128xf32>
    tpu.vector_store %arg5[%c1_33, %c0_34, %c0_35], %74 {strides = array<i32>} : memref<2x8x128xf32, #tpu.memory_space<vmem>>, vector<1x8x128xf32>,
    return
  }
  func.func @transform_0(%arg0: i32) -> (i32, i32, i32) {
    %c0_i32 = arith.constant 0 : i32
    %c0_i32_0 = arith.constant 0 : i32
    %c0_i32_1 = arith.constant 0 : i32
    return %c0_i32, %arg0, %c0_i32_0 : i32, i32, i32
  }
  func.func @transform_1(%arg0: i32) -> (i32, i32, i32) {
    %c0_i32 = arith.constant 0 : i32
    %c0_i32_0 = arith.constant 0 : i32
    %c0_i32_1 = arith.constant 0 : i32
    %c0_i32_2 = arith.constant 0 : i32
    return %c0_i32, %c0_i32_0, %c0_i32_1 : i32, i32, i32
  }
  func.func @transform_2(%arg0: i32) -> (i32, i32) {
    %c0_i32 = arith.constant 0 : i32
    %c0_i32_0 = arith.constant 0 : i32
    %c0_i32_1 = arith.constant 0 : i32
    return %c0_i32, %c0_i32_0 : i32, i32
  }
  func.func @transform_3(%arg0: i32) -> (i32, i32) {
    %c0_i32 = arith.constant 0 : i32
    %c0_i32_0 = arith.constant 0 : i32
    %c0_i32_1 = arith.constant 0 : i32
    return %c0_i32, %c0_i32_0 : i32, i32
  }
  func.func @transform_4(%arg0: i32) -> (i32, i32, i32) {
    %c0_i32 = arith.constant 0 : i32
    %c0_i32_0 = arith.constant 0 : i32
    %c0_i32_1 = arith.constant 0 : i32
    return %c0_i32, %arg0, %c0_i32_0 : i32, i32, i32
  }
}

</mosaic_0001>

<bundles_post_ra>
// kernel: dense_graphsage_forward.1
= control target key start
LH: loop header
LB: loop body
LE: loop exit
PB: predicated region body
PF: predicated region fallthrough
CT: control target
= control target key end

     0   :  { %vm42_vm0 = vcmask 1043456   ;;  %v455_v2 = vmov 0.0   ;;  %vm38_vm1 = vcmask 64512   ;;  %vm456_vm2 = vmmov 0   ;;  %s527_s0 = inlined_call_operand.vmem [shape: bf16[2,8,8], index: 0, kind: input, shape index: {}]   ;;  %s528_s1 = inlined_call_operand.vmem [shape: bf16[2,8,128], index: 1, kind: input, shape index: {}]   ;;  %s529_s2 = inlined_call_operand.vmem [shape: bf16[128,128], index: 2, kind: input, shape index: {}]   ;;  %s530_s3 = inlined_call_operand.vmem [shape: f32[1,128], index: 3, kind: input, shape index: {}]   ;;  %s531_s4 = inlined_call_operand.hbm [shape: f32[2,8,128], index: 4, kind: output, shape index: {}]  }
   0x1   :  { %v37_v0 = vld [vmem:[%s528_s1] sm:$0xf]  ;;  %v338_v1 = vld [vmem:[%s528_s1 + $0x4] sm:$0xf]  ;;  %362 = vmatprep.subr.bf16.mxu1 %v455_v2  ;;  %388 = vmatprep.subr.bf16.mxu0 %v455_v2  ;;  %v419_v7 = vld [vmem:[%s529_s2 + $0x38] sm:$0xff]  }
   0x2   :  { %v44_v3 = vsel %vm42_vm0, %v37_v0, 0  ;;  %v201_v4 = vsel %vm42_vm0, %v338_v1, 0  ;;  %v36_v5 = vld [vmem:[%s527_s0] sm:$0xf]  ;;  %v337_v6 = vld [vmem:[%s527_s0 + $0x4] sm:$0xf]  ;;  %364 = vmatprep.mubr.msk.bf16.mxu1 %vm456_vm2, %v455_v2  ;;  %390 = vmatprep.mubr.msk.bf16.mxu0 %vm456_vm2, %v455_v2 }
   0x3   :  { %363 = vmatpush3.bf16.msra.mxu1 %v44_v3  ;;  %389 = vmatpush3.bf16.msra.mxu0 %v201_v4  ;;  %v420_v8 = vld [vmem:[%s529_s2 + $0x30] sm:$0xff]   ;;  %v421_v9 = vld [vmem:[%s529_s2 + $0x28] sm:$0xff]  }
   0x4   :  { %368 = vmatprep.subr.bf16.mxu1 %v455_v2  ;;  %394 = vmatprep.subr.bf16.mxu0 %v455_v2 }
   0x6   :  { %365 = vmatmul.mubr.msk.bf16.vlgmr.msra.gmra.mxu1 %vm38_vm1, %v36_v5  ;;  %391 = vmatmul.mubr.msk.bf16.vlgmr.msra.gmra.mxu0 %vm38_vm1, %v337_v6 }
   0x7   :  { %369 = vmatpush3.bf16.msra.mxu1 %v419_v7  ;;  %395 = vmatpush3.bf16.msra.mxu0 %v419_v7 }
   0x8   :  { %370 = vmatprep.subr.bf16.mxu1 %v455_v2  ;;  %396 = vmatprep.subr.bf16.mxu0 %v455_v2 }
   0x9   :  { %384 = vmatprep.mubr.msk.bf16.mxu1 %vm456_vm2, %v455_v2  ;;  %410 = vmatprep.mubr.msk.bf16.mxu0 %vm456_vm2, %v455_v2 }
   0xb   :  { %371 = vmatpush3.bf16.msra.mxu1 %v420_v8  ;;  %397 = vmatpush3.bf16.msra.mxu0 %v420_v8 }
   0xc   :  { %9 = vsyncpa [#allocation3], 0  ;;  %372 = vmatprep.subr.bf16.mxu1 %v455_v2  ;;  %398 = vmatprep.subr.bf16.mxu0 %v455_v2  ;;  %v422_v10 = vld [vmem:[%s529_s2 + $0x20] sm:$0xff]   ;;  %v423_v11 = vld [vmem:[%s529_s2 + $0x18] sm:$0xff]  }
   0xd   :  { %v424_v12 = vld [vmem:[%s529_s2 + $0x10] sm:$0xff]   ;;  %v425_v13 = vld [vmem:[%s529_s2 + $0x8] sm:$0xff]   ;;  %v426_v14 = vld [vmem:[%s529_s2] sm:$0xff]   ;;  %s457_s2 = smov [#allocation2]  }
   0xe   :  { %v328_v25 = vld [vmem:[%s530_s3] ss:$0 sm:$0xff]  ;;  %s316_s3 = sshll.u32 %s457_s2, 4  ;;  %s317_s3 = int_to_ptr.vmem [resolvable:$true] %s316_s3 }
   0xf   :  { %373 = vmatpush3.bf16.msra.mxu1 %v421_v9  ;;  %399 = vmatpush3.bf16.msra.mxu0 %v421_v9  ;;  %s433_s13 = scalar_lea.vmem %s317_s3, 256  ;;  %p438_p1 = scmp.lt.s32.totalorder %s317_s3, %s317_s3 }
  0x10   :  { %374 = vmatprep.subr.bf16.mxu1 %v455_v2  ;;  %400 = vmatprep.subr.bf16.mxu0 %v455_v2  ;;  %p434_p0 = scmp.ne.s32.totalorder %s317_s3, %s433_s13  ;;  %p439_p2 = scmp.lt.s32.totalorder %s433_s13, %s433_s13 }
  0x12   :  { %p440_p3 = por %p439_p2, %p438_p1 }
  0x13   :  { %375 = vmatpush3.bf16.msra.mxu1 %v422_v10  ;;  %401 = vmatpush3.bf16.msra.mxu0 %v422_v10 }
  0x14   :  { %376 = vmatprep.subr.bf16.mxu1 %v455_v2  ;;  %402 = vmatprep.subr.bf16.mxu0 %v455_v2  ;;  %p441_p4 = pnand %p440_p3, %p434_p0 }
  0x17   :  { %377 = vmatpush3.bf16.msra.mxu1 %v423_v11  ;;  %403 = vmatpush3.bf16.msra.mxu0 %v423_v11 }
  0x18   :  { %378 = vmatprep.subr.bf16.mxu1 %v455_v2  ;;  %404 = vmatprep.subr.bf16.mxu0 %v455_v2 }
  0x1b   :  { %379 = vmatpush3.bf16.msra.mxu1 %v424_v12  ;;  %405 = vmatpush3.bf16.msra.mxu0 %v424_v12 }
  0x1c   :  { %380 = vmatprep.subr.bf16.mxu1 %v455_v2  ;;  %406 = vmatprep.subr.bf16.mxu0 %v455_v2 }
  0x1f   :  { %381 = vmatpush3.bf16.msra.mxu1 %v425_v13  ;;  %407 = vmatpush3.bf16.msra.mxu0 %v425_v13 }
  0x20   :  { %382 = vmatprep.subr.bf16.mxu1 %v455_v2  ;;  %408 = vmatprep.subr.bf16.mxu0 %v455_v2 }
  0x23   :  { %383 = vmatpush3.bf16.msra.mxu1 %v426_v14  ;;  %409 = vmatpush3.bf16.msra.mxu0 %v426_v14 }
  0xc6   :  { %v80_v15 = vpop.f32.mrf.mxu1  ;;  %v237_v16 = vpop.f32.mrf.mxu0 }
  0xc7   :  { %v86_v17 = vpack.c.bf16 %v80_v15, %v80_v15  ;;  %v243_v18 = vpack.c.bf16 %v237_v16, %v237_v16 }
  0xc8   :  { %v366_v19 = vpop.f32.mrf.mxu1  ;;  %v392_v20 = vpop.f32.mrf.mxu0 }
  0xc9   :  { %385 = vmatmul.mubr.bf16.vlgmr.msra.gmra.mxu1 %v86_v17  ;;  %411 = vmatmul.mubr.bf16.vlgmr.msra.gmra.mxu0 %v243_v18 }
  0xca   :  { %v83_v21 = vpop.f32.mrf.mxu1  ;;  %v240_v22 = vpop.f32.mrf.mxu0 }
  0xcc   :  { %v367_v23 = vpop.f32.mrf.mxu1  ;;  %v393_v24 = vpop.f32.mrf.mxu0 }
 0x189   :  { %v175_v26 = vpop.f32.mrf.mxu1  ;;  %v278_v27 = vpop.f32.mrf.mxu0 }
 0x18a   :  { %v176_v28 = vadd.f32 %v328_v25, %v175_v26  ;;  %v279_v29 = vadd.f32 %v328_v25, %v278_v27 }
 0x18b   :  { %v386_v30 = vpop.f32.mrf.mxu1  ;;  %v412_v31 = vpop.f32.mrf.mxu0 }
 0x18c   :  { %v181_v32 = vmul.f32 %v176_v28, %v176_v28  ;;  %v284_v35 = vmul.f32 %v279_v29, %v279_v29 }
 0x18d   :  { %v178_v33 = vpop.f32.mrf.mxu1  ;;  %v281_v34 = vpop.f32.mrf.mxu0 }
 0x18e   :  { %182 = vadd.xlane.f32.xlu0 %v181_v32 }
 0x18f   :  { %v387_v36 = vpop.f32.mrf.mxu1  ;;  %v413_v37 = vpop.f32.mrf.mxu0 }
 0x192   :  { %285 = vadd.xlane.f32.xlu0 %v284_v35 }
 0x217   :  { %v183_v38 = vpop.xlane.xlu0 %182 }
 0x218   :  { %v184_v39 = vmax.f32 %v183_v38, 1e-24 }
 0x21a   :  { %427 = vrsqrt.f32 %v184_v39 }
 0x21b   :  { %v286_v40 = vpop.xlane.xlu0 %285 }
 0x21c   :  { %v287_v41 = vmax.f32 %v286_v40, 1e-24 }
 0x21e   :  { %429 = vrsqrt.f32 %v287_v41 }
 0x227   :  { %v428_v42 = vpop.eup %427 }
 0x228   :  { %v186_v43 = vmul.f32 %v428_v42, %v176_v28 }
 0x22a   :  { %v187_v44 = vmax.f32 %v186_v43, 0.0 }
 0x22b   :  { %v430_v45 = vpop.eup %429 }
 0x22c   :  { %188 = vadd.xlane.f32.xlu1 %v187_v44  ;;  %v190_v46 = vmul.f32 %v187_v44, %v187_v44  ;;  %v289_v47 = vmul.f32 %v430_v45, %v279_v29 }
 0x22e   :  { %191 = vadd.xlane.f32.xlu0 %v190_v46  ;;  %v290_v48 = vmax.f32 %v289_v47, 0.0 }
 0x230   :  { %291 = vadd.xlane.f32.xlu1 %v290_v48  ;;  %v293_v49 = vmul.f32 %v290_v48, %v290_v48 }
 0x234   :  { %294 = vadd.xlane.f32.xlu1 %v293_v49 }
 0x2b5   :  { %v189_v50 = vpop.xlane.xlu1 %188 }
 0x2b7   :  { %v192_v54 = vpop.xlane.xlu0 %191 }
 0x2b9   :  { %v292_v51 = vpop.xlane.xlu1 %291 }
 0x2ba   :  { %v296_v52 = vadd.f32 %v292_v51, %v189_v50 }
 0x2bc   :  { %v298_v53 = vmul.f32 0.015625, %v296_v52 }
 0x2bd   :  { %v295_v55 = vpop.xlane.xlu1 %294 }
 0x2be   :  { %v297_v56 = vadd.f32 %v295_v55, %v192_v54  ;;  %v300_v57 = vmul.f32 %v298_v53, %v298_v53  ;;  %v304_v61 = vsub.f32 %v187_v44, %v298_v53  ;;  %v307_v62 = vsub.f32 %v290_v48, %v298_v53 }
 0x2c0   :  { %v299_v58 = vmul.f32 0.015625, %v297_v56 }
 0x2c2   :  { %v301_v59 = vsub.f32 %v299_v58, %v300_v57 }
 0x2c4   :  { %v302_v60 = vadd.f32 1e-05, %v301_v59 }
 0x2c6   :  { %431 = vrsqrt.f32 %v302_v60 }
 0x2d3   :  { %v432_v63 = vpop.eup %431 }
 0x2d4   :  { %v305_v0 = vmul.f32 %v432_v63, %v304_v61  ;;  %v308_v1 = vmul.f32 %v432_v63, %v307_v62 }
 0x2d6   :  { %306 = vst [vmem:[#allocation2] sm:$0xff] %v305_v0  ;;  %310 = vst [vmem:[#allocation2 + $0x8] sm:$0xff] %v308_v1 }
 0x2d7   :  { %444 = shalt.err (!%p441_p4)
}
 0x2d8   :  { %s458_s14 = smov 128   ;;  %s459_s15 = smov 8  }
 0x2d9   :  { %322 = dma.vmem_to_hbm [thread:$0]  %s317_s3, 256, %s531_s4, [#allocation3], %s458_s14, %s458_s14, %s459_s15  }
 0x2da   :  { %453 = dma.done.wait [#allocation3], 256  }
 0x2db   :  { %454 = vsyncadd [#allocation3], 4294967040 }
 0x2dc   :  { %326 = vsyncpa [#allocation3], 1 }

</bundles_post_ra>
